<compile_context>
chip_gen: v7x
topology: tpu7x:2x2x1
jax: 0.10.0
libtpu: 0.0.40
codegen_flags: <defaults>
</compile_context>

<pallas_src>
import functools

import jax
import jax.numpy as jnp
from jax.experimental import pallas as pl
from jax.experimental.pallas import tpu as pltpu

D_MODEL = 512          # module default
HIDDEN = 256           # fixed in nn.Sequential
LATENT_DIM = 16        # module default
LN_EPS = 1e-5          # nn.LayerNorm default


def channel_encoder_kernel(x_ref, w1_ref, b1_ref, w2_ref, p_ref, o_ref):
    # --- Linear(d_model, 256): bf16 MXU matmul, f32 accumulation ---
    x = x_ref[...]                                        # (tm, d_model)
    if x.dtype != jnp.bfloat16:                           # no-op when fed bf16 activations
        x = x.astype(jnp.bfloat16)
    h = jnp.dot(x, w1_ref[...],                           # w1 already bf16
                preferred_element_type=jnp.float32)
    h = h + b1_ref[...]                                   # (tm, H) + (1, H)  f32
    h = jnp.maximum(h, 0.0)                               # ReLU (VPU)

    # --- Linear(256, latent): bf16 MXU matmul, f32 accumulation ---
    y = jnp.dot(h.astype(jnp.bfloat16), w2_ref[...],      # w2 already bf16
                preferred_element_type=jnp.float32)

    # Merged (3, latent) params: row 0 = b2, row 1 = gamma, row 2 = beta.
    params = p_ref[...]
    b2 = params[0:1, :]
    gamma = params[1:2, :]
    beta = params[2:3, :]

    y = y + b2                                            # (tm, L) + (1, L)

    # --- LayerNorm over last dim (biased variance, matches PyTorch), all f32 ---
    mean = jnp.mean(y, axis=-1, keepdims=True)
    centered = y - mean
    var = jnp.mean(centered * centered, axis=-1, keepdims=True)
    y_norm = centered * jax.lax.rsqrt(var + LN_EPS)
    out = y_norm * gamma + beta

    # TODO(synk): latent_dim=16 output is only 16/128 lanes wide (masked stores);
    # a lane-dense repack (pack 8 rows per 128-lane row) would mostly help v5e, but
    # output bytes are ~3% of input bytes so it is left unpacked here.
    o_ref[...] = out.astype(o_ref.dtype)


def _round_up(v, m):
    return ((v + m - 1) // m) * m


@functools.partial(jax.jit, static_argnames=("row_tile",))
def channel_encoder(x, w1, b1, w2, b2, gamma, beta, *, row_tile=None):
    """x: [batch, seq_len, d_model] -> [batch, seq_len, latent_dim].

    w1: (d_model, 256), w2: (256, latent)  -- i.e. PyTorch nn.Linear weight.T
    Accepts f32 or bf16 activations; feeding bf16 halves HBM read traffic.
    """
    batch, seq_len, d_model = x.shape
    hidden = w1.shape[1]
    latent_dim = w2.shape[1]
    rows = batch * seq_len

    # --- choose row tile (all shape-based, static under jit) ---
    if row_tile is None:
        row_tile = 1024                       # sweep 1024-2048; bigger pays off on v7x
    if rows > 256:
        # Ensure >= 2 grid steps so v7x's two TensorCores both get a tile.
        row_tile = min(row_tile, _round_up(-(-rows // 2), 256))
    if rows <= row_tile:
        row_tile = rows                       # single block == full dim (exempt from /8 rule)

    x2d = x.reshape(rows, d_model)            # no padding copy: partial last block is masked

    # Weights pre-cast to bf16 once (small, resident in VMEM); f32 accumulation
    # happens inside the kernel so precision is preserved.
    w1_bf = w1.astype(jnp.bfloat16)
    w2_bf = w2.astype(jnp.bfloat16)

    # Biases / LN params in f32. b2/gamma/beta merged into a single (3, latent) block.
    b1_2d = b1.reshape(1, hidden).astype(jnp.float32)
    ln_params = jnp.stack(
        [b2.astype(jnp.float32),
         gamma.astype(jnp.float32),
         beta.astype(jnp.float32)], axis=0)   # (3, latent)

    grid = (pl.cdiv(rows, row_tile),)

    out2d = pl.pallas_call(
        channel_encoder_kernel,
        out_shape=jax.ShapeDtypeStruct((rows, latent_dim), x.dtype),
        grid_spec=pltpu.PrefetchScalarGridSpec(
            num_scalar_prefetch=0,
            grid=grid,
            in_specs=[
                pl.BlockSpec((row_tile, d_model), lambda i: (i, 0)),   # x tile
                pl.BlockSpec((d_model, hidden), lambda i: (0, 0)),     # W1 (resident, bf16)
                pl.BlockSpec((1, hidden), lambda i: (0, 0)),           # b1 (f32)
                pl.BlockSpec((hidden, latent_dim), lambda i: (0, 0)),  # W2 (resident, bf16)
                pl.BlockSpec((3, latent_dim), lambda i: (0, 0)),       # b2/gamma/beta
            ],
            out_specs=pl.BlockSpec((row_tile, latent_dim), lambda i: (i, 0)),
        ),
        compiler_params=pltpu.CompilerParams(
            dimension_semantics=("parallel",),       # shards rows across TCs on v7x
            vmem_limit_bytes=32 * 1024 * 1024,       # v5e default scoped limit is 16 MiB
        ),
    )(x2d, w1_bf, b1_2d, w2_bf, ln_params)

    return out2d.reshape(batch, seq_len, latent_dim)


def reference_forward_f32(x, w1, b1, w2, b2, gamma, beta):
    """Pure-f32 plain-JAX reference (mirrors the PyTorch module exactly)."""
    h = jnp.maximum(jnp.dot(x, w1) + b1, 0.0)
    y = jnp.dot(h, w2) + b2
    mean = jnp.mean(y, axis=-1, keepdims=True)
    var = jnp.mean((y - mean) ** 2, axis=-1, keepdims=True)
    return (y - mean) / jnp.sqrt(var + LN_EPS) * gamma + beta


def reference_forward_mixed(x, w1, b1, w2, b2, gamma, beta):
    """Reference mirroring the kernel's mixed precision (bf16 matmul inputs,
    f32 accumulation / bias / LayerNorm)."""
    h = jnp.dot(x.astype(jnp.bfloat16), w1.astype(jnp.bfloat16),
                preferred_element_type=jnp.float32) + b1
    h = jnp.maximum(h, 0.0)
    y = jnp.dot(h.astype(jnp.bfloat16), w2.astype(jnp.bfloat16),
                preferred_element_type=jnp.float32) + b2
    mean = jnp.mean(y, axis=-1, keepdims=True)
    var = jnp.mean((y - mean) ** 2, axis=-1, keepdims=True)
    return (y - mean) / jnp.sqrt(var + LN_EPS) * gamma + beta


def _check(x, w1, b1, w2, b2, gamma, beta):
    out = jax.block_until_ready(channel_encoder(x, w1, b1, w2, b2, gamma, beta))
    assert out.shape == (x.shape[0], x.shape[1], w2.shape[1]), out.shape

    # Primary check: kernel vs a reference using identical mixed precision.
    ref_mixed = reference_forward_mixed(x, w1, b1, w2, b2, gamma, beta)
    err_mixed = float(jnp.max(jnp.abs(out - ref_mixed)))
    assert jnp.allclose(out, ref_mixed, atol=1e-3, rtol=1e-3), err_mixed

    # Sanity check: still close to the full-f32 module semantics
    # (bf16 matmul inputs bound the deviation; LayerNorm keeps outputs O(1)).
    ref_f32 = reference_forward_f32(x, w1, b1, w2, b2, gamma, beta)
    err_f32 = float(jnp.max(jnp.abs(out - ref_f32)))
    assert jnp.allclose(out, ref_f32, atol=1e-1, rtol=1e-1), err_f32


if __name__ == "__main__":
    key = jax.random.PRNGKey(0)
    k_x, k_w1, k_b1, k_w2, k_b2, k_x2 = jax.random.split(key, 6)

    # Deterministic synthetic parameters (PyTorch-Linear-like scaling),
    # laid out as (in_features, out_features).
    w1 = jax.random.uniform(k_w1, (D_MODEL, HIDDEN), jnp.float32,
                            minval=-1.0, maxval=1.0) / jnp.sqrt(D_MODEL)
    b1 = jax.random.uniform(k_b1, (HIDDEN,), jnp.float32,
                            minval=-1.0, maxval=1.0) / jnp.sqrt(D_MODEL)
    w2 = jax.random.uniform(k_w2, (HIDDEN, LATENT_DIM), jnp.float32,
                            minval=-1.0, maxval=1.0) / jnp.sqrt(HIDDEN)
    b2 = jax.random.uniform(k_b2, (LATENT_DIM,), jnp.float32,
                            minval=-1.0, maxval=1.0) / jnp.sqrt(HIDDEN)
    gamma = jnp.ones((LATENT_DIM,), jnp.float32)   # nn.LayerNorm default weight
    beta = jnp.zeros((LATENT_DIM,), jnp.float32)   # nn.LayerNorm default bias

    # Case 1: small shape from the spec (batch=2, seq_len=8) -> single full block.
    x_small = jax.random.normal(k_x, (2, 8, D_MODEL), dtype=jnp.float32)
    _check(x_small, w1, b1, w2, b2, gamma, beta)

    # Case 2: non-aligned row count (3*100 = 300 rows) -> 2 grid steps, masked
    # partial last block (exercises the no-pad path and the v7x 2-TC split).
    x_odd = jax.random.normal(k_x2, (3, 100, D_MODEL), dtype=jnp.float32)
    _check(x_odd, w1, b1, w2, b2, gamma, beta)

    print("KERNEL_OK")
</pallas_src>

<mosaic_0001>
module attributes {stable_mosaic.version = 11 : i64} {
  func.func @channel_encoder_kernel(%arg0: i32, %arg1: memref<16x512xf32, #tpu.memory_space<vmem>>, %arg2: memref<512x256xbf16, #tpu.memory_space<vmem>>, %arg3: memref<1x256xf32, #tpu.memory_space<vmem>>, %arg4: memref<256x16xbf16, #tpu.memory_space<vmem>>, %arg5: memref<3x16xf32, #tpu.memory_space<vmem>>, %arg6: memref<16x16xf32, #tpu.memory_space<vmem>>) attributes {dimension_semantics = [#tpu.dimension_semantics<parallel>], iteration_bounds = array<i64: 1>, scalar_prefetch = 0 : i64, scratch_operands = 0 : i64, tpu.core_type = #tpu.core_type<tc>, window_params = [{transform_indices = @transform_0, window_bounds = array<i64: 16, 512>}, {pipeline_mode = #tpu.pipeline_mode<synchronous>, transform_indices = @transform_1, window_bounds = array<i64: 512, 256>}, {pipeline_mode = #tpu.pipeline_mode<synchronous>, transform_indices = @transform_2, window_bounds = array<i64: 1, 256>}, {pipeline_mode = #tpu.pipeline_mode<synchronous>, transform_indices = @transform_3, window_bounds = array<i64: 256, 16>}, {pipeline_mode = #tpu.pipeline_mode<synchronous>, transform_indices = @transform_4, window_bounds = array<i64: 3, 16>}, {transform_indices = @transform_5, window_bounds = array<i64: 16, 16>}]} {
    %c0 = arith.constant 0 : index
    %c0_0 = arith.constant 0 : index
    %0 = vector.load %arg1[%c0, %c0_0] : memref<16x512xf32, #tpu.memory_space<vmem>>, vector<16x512xf32>
    %1 = arith.truncf %0 : vector<16x512xf32> to vector<16x512xbf16>
    %c0_1 = arith.constant 0 : index
    %c0_2 = arith.constant 0 : index
    %2 = vector.load %arg2[%c0_1, %c0_2] : memref<512x256xbf16, #tpu.memory_space<vmem>>, vector<512x256xbf16>
    %cst = arith.constant dense<0.000000e+00> : vector<16x256xf32>
    %3 = tpu.matmul %1, %2, %cst {dimension_numbers = #tpu.dot_dimension_numbers<[1], [0], [0], [1], [0, 0, 1, 1], [], []>} : vector<16x512xbf16>, vector<512x256xbf16>, vector<16x256xf32> -> vector<16x256xf32>
    %c0_3 = arith.constant 0 : index
    %c0_4 = arith.constant 0 : index
    %4 = vector.load %arg3[%c0_3, %c0_4] : memref<1x256xf32, #tpu.memory_space<vmem>>, vector<1x256xf32>
    %5 = vector.broadcast %4 : vector<1x256xf32> to vector<16x256xf32>
    %6 = arith.addf %3, %5 : vector<16x256xf32>
    %cst_5 = arith.constant 0.000000e+00 : f32
    %7 = vector.broadcast %cst_5 : f32 to vector<16x256xf32>
    %8 = arith.maximumf %6, %7 : vector<16x256xf32>
    %9 = arith.truncf %8 : vector<16x256xf32> to vector<16x256xbf16>
    %c0_6 = arith.constant 0 : index
    %c0_7 = arith.constant 0 : index
    %10 = vector.load %arg4[%c0_6, %c0_7] : memref<256x16xbf16, #tpu.memory_space<vmem>>, vector<256x16xbf16>
    %cst_8 = arith.constant dense<0.000000e+00> : vector<16x16xf32>
    %11 = tpu.matmul %9, %10, %cst_8 {dimension_numbers = #tpu.dot_dimension_numbers<[1], [0], [0], [1], [0, 0, 1, 1], [], []>} : vector<16x256xbf16>, vector<256x16xbf16>, vector<16x16xf32> -> vector<16x16xf32>
    %c0_9 = arith.constant 0 : index
    %c0_10 = arith.constant 0 : index
    %12 = vector.load %arg5[%c0_9, %c0_10] : memref<3x16xf32, #tpu.memory_space<vmem>>, vector<3x16xf32>
    %13 = vector.extract_strided_slice %12 {offsets = [0, 0], sizes = [1, 16], strides = [1, 1]} : vector<3x16xf32> to vector<1x16xf32>
    %14 = vector.extract_strided_slice %12 {offsets = [1, 0], sizes = [1, 16], strides = [1, 1]} : vector<3x16xf32> to vector<1x16xf32>
    %15 = vector.extract_strided_slice %12 {offsets = [2, 0], sizes = [1, 16], strides = [1, 1]} : vector<3x16xf32> to vector<1x16xf32>
    %16 = vector.broadcast %13 : vector<1x16xf32> to vector<16x16xf32>
    %17 = arith.addf %11, %16 : vector<16x16xf32>
    %cst_11 = arith.constant dense<0.000000e+00> : vector<16xf32>
    %18 = vector.multi_reduction <add>, %17, %cst_11 [1] : vector<16x16xf32> to vector<16xf32>
    %19 = vector.shape_cast %18 : vector<16xf32> to vector<16x1xf32>
    %cst_12 = arith.constant 1.600000e+01 : f32
    %20 = vector.broadcast %cst_12 : f32 to vector<16x1xf32>
    %21 = arith.divf %19, %20 : vector<16x1xf32>
    %22 = vector.broadcast %21 : vector<16x1xf32> to vector<16x16xf32>
    %23 = arith.subf %17, %22 : vector<16x16xf32>
    %24 = arith.mulf %23, %23 : vector<16x16xf32>
    %cst_13 = arith.constant dense<0.000000e+00> : vector<16xf32>
    %25 = vector.multi_reduction <add>, %24, %cst_13 [1] : vector<16x16xf32> to vector<16xf32>
    %26 = vector.shape_cast %25 : vector<16xf32> to vector<16x1xf32>
    %cst_14 = arith.constant 1.600000e+01 : f32
    %27 = vector.broadcast %cst_14 : f32 to vector<16x1xf32>
    %28 = arith.divf %26, %27 : vector<16x1xf32>
    %cst_15 = arith.constant 9.99999974E-6 : f32
    %29 = vector.broadcast %cst_15 : f32 to vector<16x1xf32>
    %30 = arith.addf %28, %29 : vector<16x1xf32>
    %31 = math.rsqrt %30 : vector<16x1xf32>
    %32 = vector.broadcast %31 : vector<16x1xf32> to vector<16x16xf32>
    %33 = arith.mulf %23, %32 : vector<16x16xf32>
    %34 = vector.broadcast %14 : vector<1x16xf32> to vector<16x16xf32>
    %35 = arith.mulf %33, %34 : vector<16x16xf32>
    %36 = vector.broadcast %15 : vector<1x16xf32> to vector<16x16xf32>
    %37 = arith.addf %35, %36 : vector<16x16xf32>
    %c0_16 = arith.constant 0 : index
    %c0_17 = arith.constant 0 : index
    %38 = vector.load %arg6[%c0_16, %c0_17] : memref<16x16xf32, #tpu.memory_space<vmem>>, vector<16x16xf32>
    tpu.vector_store %arg6[%c0_16, %c0_17], %37 {strides = array<i32>} : memref<16x16xf32, #tpu.memory_space<vmem>>, vector<16x16xf32>,
    return
  }
  func.func @transform_0(%arg0: i32) -> (i32, i32) {
    %c0_i32 = arith.constant 0 : i32
    %c0_i32_0 = arith.constant 0 : i32
    return %arg0, %c0_i32 : i32, i32
  }
  func.func @transform_1(%arg0: i32) -> (i32, i32) {
    %c0_i32 = arith.constant 0 : i32
    %c0_i32_0 = arith.constant 0 : i32
    %c0_i32_1 = arith.constant 0 : i32
    return %c0_i32, %c0_i32_0 : i32, i32
  }
  func.func @transform_2(%arg0: i32) -> (i32, i32) {
    %c0_i32 = arith.constant 0 : i32
    %c0_i32_0 = arith.constant 0 : i32
    %c0_i32_1 = arith.constant 0 : i32
    return %c0_i32, %c0_i32_0 : i32, i32
  }
  func.func @transform_3(%arg0: i32) -> (i32, i32) {
    %c0_i32 = arith.constant 0 : i32
    %c0_i32_0 = arith.constant 0 : i32
    %c0_i32_1 = arith.constant 0 : i32
    return %c0_i32, %c0_i32_0 : i32, i32
  }
  func.func @transform_4(%arg0: i32) -> (i32, i32) {
    %c0_i32 = arith.constant 0 : i32
    %c0_i32_0 = arith.constant 0 : i32
    %c0_i32_1 = arith.constant 0 : i32
    return %c0_i32, %c0_i32_0 : i32, i32
  }
  func.func @transform_5(%arg0: i32) -> (i32, i32) {
    %c0_i32 = arith.constant 0 : i32
    %c0_i32_0 = arith.constant 0 : i32
    return %arg0, %c0_i32 : i32, i32
  }
}

</mosaic_0001>

<bundles_post_ra>
// kernel: channel_encoder.1
= control target key start
LH: loop header
LB: loop body
LE: loop exit
PB: predicated region body
PF: predicated region fallthrough
CT: control target
= control target key end

     0   :  { %s1337_s0 = inlined_call_operand.vmem [shape: f32[16,512], index: 0, kind: input, shape index: {}]   ;;  %s1338_s1 = inlined_call_operand.vmem [shape: bf16[512,256], index: 1, kind: input, shape index: {}]   ;;  %s1339_s2 = inlined_call_operand.vmem [shape: f32[1,256], index: 2, kind: input, shape index: {}]   ;;  %s1340_s3 = inlined_call_operand.vmem [shape: bf16[256,16], index: 3, kind: input, shape index: {}]   ;;  %s1341_s4 = inlined_call_operand.vmem [shape: f32[3,16], index: 4, kind: input, shape index: {}]   ;;  %s1342_s5 = inlined_call_operand.hbm [shape: f32[16,16], index: 5, kind: output, shape index: {}]  }
   0x1   :  { %v867_v0 = vld [vmem:[%s1338_s1 + $0x4] ss:$8 sps:$4 sm:$0xff]   ;;  %v871_v2 = vld [vmem:[%s1338_s1] ss:$8 sps:$4 sm:$0xff]   ;;  %v873_v4 = vld [vmem:[%s1338_s1 + $0x14] ss:$8 sps:$4 sm:$0xff]  }
   0x2   :  { %v869_v1 = vld [vmem:[%s1338_s1 + $0x104] ss:$8 sps:$4 sm:$0xff]   ;;  %430 = vmatprep.subr.bf16.mxu1 %v867_v0  ;;  %v872_v3 = vld [vmem:[%s1338_s1 + $0x100] ss:$8 sps:$4 sm:$0xff]   ;;  %v875_v5 = vld [vmem:[%s1338_s1 + $0x114] ss:$8 sps:$4 sm:$0xff]  }
   0x3   :  { %473 = vmatprep.subr.bf16.mxu0 %v869_v1  ;;  %431 = vmatpush1.bf16.msra.mxu1 %v871_v2  ;;  %v877_v6 = vld [vmem:[%s1338_s1 + $0x10] ss:$8 sps:$4 sm:$0xff]   ;;  %v879_v8 = vld [vmem:[%s1338_s1 + $0x24] ss:$8 sps:$4 sm:$0xff]   ;;  %v883_v10 = vld [vmem:[%s1338_s1 + $0x20] ss:$8 sps:$4 sm:$0xff]  }
   0x4   :  { %474 = vmatpush1.bf16.msra.mxu0 %v872_v3  ;;  %432 = vmatprep.subr.bf16.mxu1 %v873_v4  ;;  %v878_v7 = vld [vmem:[%s1338_s1 + $0x110] ss:$8 sps:$4 sm:$0xff]   ;;  %v881_v9 = vld [vmem:[%s1338_s1 + $0x124] ss:$8 sps:$4 sm:$0xff]   ;;  %v884_v11 = vld [vmem:[%s1338_s1 + $0x120] ss:$8 sps:$4 sm:$0xff]  }
   0x5   :  { %475 = vmatprep.subr.bf16.mxu0 %v875_v5  ;;  %v885_v12 = vld [vmem:[%s1338_s1 + $0x34] ss:$8 sps:$4 sm:$0xff]   ;;  %v889_v14 = vld [vmem:[%s1338_s1 + $0x30] ss:$8 sps:$4 sm:$0xff]   ;;  %v891_v16 = vld [vmem:[%s1338_s1 + $0x44] ss:$8 sps:$4 sm:$0xff]  }
   0x6   :  { %v887_v13 = vld [vmem:[%s1338_s1 + $0x134] ss:$8 sps:$4 sm:$0xff]   ;;  %v890_v15 = vld [vmem:[%s1338_s1 + $0x130] ss:$8 sps:$4 sm:$0xff]   ;;  %v893_v17 = vld [vmem:[%s1338_s1 + $0x144] ss:$8 sps:$4 sm:$0xff]  }
   0x7   :  { %433 = vmatpush1.bf16.msra.mxu1 %v877_v6  ;;  %v895_v18 = vld [vmem:[%s1338_s1 + $0x40] ss:$8 sps:$4 sm:$0xff]   ;;  %v897_v20 = vld [vmem:[%s1338_s1 + $0x54] ss:$8 sps:$4 sm:$0xff]   ;;  %v901_v22 = vld [vmem:[%s1338_s1 + $0x50] ss:$8 sps:$4 sm:$0xff]  }
   0x8   :  { %476 = vmatpush1.bf16.msra.mxu0 %v878_v7  ;;  %434 = vmatprep.subr.bf16.mxu1 %v879_v8  ;;  %v896_v19 = vld [vmem:[%s1338_s1 + $0x140] ss:$8 sps:$4 sm:$0xff]   ;;  %v899_v21 = vld [vmem:[%s1338_s1 + $0x154] ss:$8 sps:$4 sm:$0xff]   ;;  %v902_v23 = vld [vmem:[%s1338_s1 + $0x150] ss:$8 sps:$4 sm:$0xff]  }
   0x9   :  { %477 = vmatprep.subr.bf16.mxu0 %v881_v9  ;;  %v903_v24 = vld [vmem:[%s1338_s1 + $0x64] ss:$8 sps:$4 sm:$0xff]   ;;  %v907_v26 = vld [vmem:[%s1338_s1 + $0x60] ss:$8 sps:$4 sm:$0xff]   ;;  %v909_v28 = vld [vmem:[%s1338_s1 + $0x74] ss:$8 sps:$4 sm:$0xff]  }
   0xa   :  { %v905_v25 = vld [vmem:[%s1338_s1 + $0x164] ss:$8 sps:$4 sm:$0xff]   ;;  %v908_v27 = vld [vmem:[%s1338_s1 + $0x160] ss:$8 sps:$4 sm:$0xff]   ;;  %v911_v29 = vld [vmem:[%s1338_s1 + $0x174] ss:$8 sps:$4 sm:$0xff]  }
   0xb   :  { %435 = vmatpush1.bf16.msra.mxu1 %v883_v10  ;;  %v913_v30 = vld [vmem:[%s1338_s1 + $0x70] ss:$8 sps:$4 sm:$0xff]   ;;  %v915_v32 = vld [vmem:[%s1338_s1 + $0x84] ss:$8 sps:$4 sm:$0xff]   ;;  %v919_v34 = vld [vmem:[%s1338_s1 + $0x80] ss:$8 sps:$4 sm:$0xff]  }
   0xc   :  { %478 = vmatpush1.bf16.msra.mxu0 %v884_v11  ;;  %436 = vmatprep.subr.bf16.mxu1 %v885_v12  ;;  %v914_v31 = vld [vmem:[%s1338_s1 + $0x170] ss:$8 sps:$4 sm:$0xff]   ;;  %v917_v33 = vld [vmem:[%s1338_s1 + $0x184] ss:$8 sps:$4 sm:$0xff]   ;;  %v920_v35 = vld [vmem:[%s1338_s1 + $0x180] ss:$8 sps:$4 sm:$0xff]  }
   0xd   :  { %479 = vmatprep.subr.bf16.mxu0 %v887_v13  ;;  %v921_v36 = vld [vmem:[%s1338_s1 + $0x94] ss:$8 sps:$4 sm:$0xff]   ;;  %v925_v38 = vld [vmem:[%s1338_s1 + $0x90] ss:$8 sps:$4 sm:$0xff]   ;;  %v927_v40 = vld [vmem:[%s1338_s1 + $0xa4] ss:$8 sps:$4 sm:$0xff]  }
   0xe   :  { %v923_v37 = vld [vmem:[%s1338_s1 + $0x194] ss:$8 sps:$4 sm:$0xff]   ;;  %v926_v39 = vld [vmem:[%s1338_s1 + $0x190] ss:$8 sps:$4 sm:$0xff]   ;;  %v929_v41 = vld [vmem:[%s1338_s1 + $0x1a4] ss:$8 sps:$4 sm:$0xff]  }
   0xf   :  { %437 = vmatpush1.bf16.msra.mxu1 %v889_v14  ;;  %v931_v42 = vld [vmem:[%s1338_s1 + $0xa0] ss:$8 sps:$4 sm:$0xff]   ;;  %v933_v44 = vld [vmem:[%s1338_s1 + $0xb4] ss:$8 sps:$4 sm:$0xff]   ;;  %v937_v50 = vld [vmem:[%s1338_s1 + $0xb0] ss:$8 sps:$4 sm:$0xff]  }
  0x10   :  { %480 = vmatpush1.bf16.msra.mxu0 %v890_v15  ;;  %438 = vmatprep.subr.bf16.mxu1 %v891_v16  ;;  %v932_v43 = vld [vmem:[%s1338_s1 + $0x1a0] ss:$8 sps:$4 sm:$0xff]   ;;  %v935_v45 = vld [vmem:[%s1338_s1 + $0x1b4] ss:$8 sps:$4 sm:$0xff]   ;;  %v938_v51 = vld [vmem:[%s1338_s1 + $0x1b0] ss:$8 sps:$4 sm:$0xff]  }
  0x11   :  { %481 = vmatprep.subr.bf16.mxu0 %v893_v17  ;;  %v23_v46 = vld [vmem:[%s1337_s0 + $0x8] sm:$0xff]  ;;  %v25_v48 = vld [vmem:[%s1337_s0 + $0x18] sm:$0xff]  ;;  %v22_v6 = vld [vmem:[%s1337_s0] sm:$0xff] }
  0x12   :  { %v27_v47 = vld [vmem:[%s1337_s0 + $0x28] sm:$0xff]  ;;  %v29_v49 = vld [vmem:[%s1337_s0 + $0x38] sm:$0xff] }
  0x13   :  { %439 = vmatpush1.bf16.msra.mxu1 %v895_v18  ;;  %v939_v52 = vld [vmem:[%s1338_s1 + $0xc4] ss:$8 sps:$4 sm:$0xff]   ;;  %v31_v53 = vpack.c.bf16 %v27_v47, %v23_v46  ;;  %v33_v54 = vpack.c.bf16 %v29_v49, %v25_v48  ;;  %v943_v56 = vld [vmem:[%s1338_s1 + $0xc0] ss:$8 sps:$4 sm:$0xff]   ;;  %v945_v58 = vld [vmem:[%s1338_s1 + $0xd4] ss:$8 sps:$4 sm:$0xff]  }
  0x14   :  { %482 = vmatpush1.bf16.msra.mxu0 %v896_v19  ;;  %440 = vmatprep.subr.bf16.mxu1 %v897_v20  ;;  %v941_v55 = vld [vmem:[%s1338_s1 + $0x1c4] ss:$8 sps:$4 sm:$0xff]   ;;  %v944_v57 = vld [vmem:[%s1338_s1 + $0x1c0] ss:$8 sps:$4 sm:$0xff]   ;;  %v947_v59 = vld [vmem:[%s1338_s1 + $0x1d4] ss:$8 sps:$4 sm:$0xff]  }
  0x15   :  { %483 = vmatprep.subr.bf16.mxu0 %v899_v21  ;;  %462 = vmatprep.mubr.bf16.mxu1 %v31_v53  ;;  %v949_v60 = vld [vmem:[%s1338_s1 + $0xd0] ss:$8 sps:$4 sm:$0xff]   ;;  %v951_v62 = vld [vmem:[%s1338_s1 + $0xe4] ss:$8 sps:$4 sm:$0xff]   ;;  %v955_v0 = vld [vmem:[%s1338_s1 + $0xe0] ss:$8 sps:$4 sm:$0xff]  }
  0x16   :  { %505 = vmatprep.mubr.bf16.mxu0 %v33_v54  ;;  %v950_v61 = vld [vmem:[%s1338_s1 + $0x1d0] ss:$8 sps:$4 sm:$0xff]   ;;  %v953_v63 = vld [vmem:[%s1338_s1 + $0x1e4] ss:$8 sps:$4 sm:$0xff]   ;;  %v956_v1 = vld [vmem:[%s1338_s1 + $0x1e0] ss:$8 sps:$4 sm:$0xff]  }
  0x17   :  { %441 = vmatpush1.bf16.msra.mxu1 %v901_v22  ;;  %v957_v2 = vld [vmem:[%s1338_s1 + $0xf4] ss:$8 sps:$4 sm:$0xff]   ;;  %v961_v4 = vld [vmem:[%s1338_s1 + $0xf0] ss:$8 sps:$4 sm:$0xff]  }
  0x18   :  { %484 = vmatpush1.bf16.msra.mxu0 %v902_v23  ;;  %442 = vmatprep.subr.bf16.mxu1 %v903_v24  ;;  %v959_v3 = vld [vmem:[%s1338_s1 + $0x1f4] ss:$8 sps:$4 sm:$0xff]   ;;  %v962_v5 = vld [vmem:[%s1338_s1 + $0x1f0] ss:$8 sps:$4 sm:$0xff]  }
  0x19   :  { %485 = vmatprep.subr.bf16.mxu0 %v905_v25 }
  0x1b   :  { %443 = vmatpush1.bf16.msra.mxu1 %v907_v26 }
  0x1c   :  { %486 = vmatpush1.bf16.msra.mxu0 %v908_v27  ;;  %444 = vmatprep.subr.bf16.mxu1 %v909_v28 }
  0x1d   :  { %487 = vmatprep.subr.bf16.mxu0 %v911_v29 }
  0x1f   :  { %445 = vmatpush1.bf16.msra.mxu1 %v913_v30 }
  0x20   :  { %488 = vmatpush1.bf16.msra.mxu0 %v914_v31  ;;  %446 = vmatprep.subr.bf16.mxu1 %v915_v32 }
  0x21   :  { %489 = vmatprep.subr.bf16.mxu0 %v917_v33 }
  0x23   :  { %447 = vmatpush1.bf16.msra.mxu1 %v919_v34 }
  0x24   :  { %490 = vmatpush1.bf16.msra.mxu0 %v920_v35  ;;  %448 = vmatprep.subr.bf16.mxu1 %v921_v36 }
  0x25   :  { %491 = vmatprep.subr.bf16.mxu0 %v923_v37 }
  0x27   :  { %449 = vmatpush1.bf16.msra.mxu1 %v925_v38 }
  0x28   :  { %492 = vmatpush1.bf16.msra.mxu0 %v926_v39  ;;  %450 = vmatprep.subr.bf16.mxu1 %v927_v40 }
  0x29   :  { %493 = vmatprep.subr.bf16.mxu0 %v929_v41 }
  0x2b   :  { %451 = vmatpush1.bf16.msra.mxu1 %v931_v42 }
  0x2c   :  { %494 = vmatpush1.bf16.msra.mxu0 %v932_v43  ;;  %452 = vmatprep.subr.bf16.mxu1 %v933_v44 }
  0x2d   :  { %495 = vmatprep.subr.bf16.mxu0 %v935_v45 }
  0x2f   :  { %453 = vmatpush1.bf16.msra.mxu1 %v937_v50 }
  0x30   :  { %496 = vmatpush1.bf16.msra.mxu0 %v938_v51  ;;  %454 = vmatprep.subr.bf16.mxu1 %v939_v52 }
  0x31   :  { %497 = vmatprep.subr.bf16.mxu0 %v941_v55 }
  0x33   :  { %455 = vmatpush1.bf16.msra.mxu1 %v943_v56 }
  0x34   :  { %498 = vmatpush1.bf16.msra.mxu0 %v944_v57  ;;  %456 = vmatprep.subr.bf16.mxu1 %v945_v58 }
  0x35   :  { %499 = vmatprep.subr.bf16.mxu0 %v947_v59 }
  0x37   :  { %457 = vmatpush1.bf16.msra.mxu1 %v949_v60 }
  0x38   :  { %500 = vmatpush1.bf16.msra.mxu0 %v950_v61  ;;  %458 = vmatprep.subr.bf16.mxu1 %v951_v62 }
  0x39   :  { %501 = vmatprep.subr.bf16.mxu0 %v953_v63 }
  0x3a   :  { %10 = vsyncpa [#allocation3], 0  ;;  %v26_v7 = vld [vmem:[%s1337_s0 + $0x20] sm:$0xff]  ;;  %v24_v8 = vld [vmem:[%s1337_s0 + $0x10] sm:$0xff]  ;;  %v100_v28 = vlaneseq  ;;  %vm696_vm0 = vcmask 130048  }
  0x3b   :  { %459 = vmatpush1.bf16.msra.mxu1 %v955_v0  ;;  %v28_v9 = vld [vmem:[%s1337_s0 + $0x30] sm:$0xff]  ;;  %v963_v10 = vld [vmem:[%s1340_s3 + $0x40] sm:$0xff]   ;;  %v30_v11 = vpack.c.bf16 %v26_v7, %v22_v6  ;;  %v965_v14 = vld [vmem:[%s1340_s3 + $0x48] sm:$0xff]  }
  0x3c   :  { %502 = vmatpush1.bf16.msra.mxu0 %v956_v1  ;;  %460 = vmatprep.subr.bf16.mxu1 %v957_v2  ;;  %v32_v12 = vpack.c.bf16 %v28_v9, %v24_v8  ;;  %v964_v13 = vld [vmem:[%s1340_s3] sm:$0xff]   ;;  %v966_v15 = vld [vmem:[%s1340_s3 + $0x8] sm:$0xff]   ;;  %v967_v16 = vld [vmem:[%s1340_s3 + $0x50] sm:$0xff]   ;;  %v1304_v29 = vshrl.u32 %v100_v28, 7 }
  0x3d   :  { %503 = vmatprep.subr.bf16.mxu0 %v959_v3  ;;  %v968_v17 = vld [vmem:[%s1340_s3 + $0x10] sm:$0xff]   ;;  %v969_v18 = vld [vmem:[%s1340_s3 + $0x58] sm:$0xff]   ;;  %v971_v20 = vld [vmem:[%s1340_s3 + $0x60] sm:$0xff]  }
  0x3e   :  { %v970_v19 = vld [vmem:[%s1340_s3 + $0x18] sm:$0xff]   ;;  %v972_v21 = vld [vmem:[%s1340_s3 + $0x20] sm:$0xff]   ;;  %v973_v22 = vld [vmem:[%s1340_s3 + $0x68] sm:$0xff]   ;;  %v102_v30 = vsub.s32 0, %v1304_v29  ;;  %v106_v32 = vsub.s32 1, %v1304_v29 }
  0x3f   :  { %461 = vmatpush1.bf16.msra.mxu1 %v961_v4  ;;  %v974_v23 = vld [vmem:[%s1340_s3 + $0x28] sm:$0xff]   ;;  %v975_v24 = vld [vmem:[%s1340_s3 + $0x70] sm:$0xff]   ;;  %v977_v26 = vld [vmem:[%s1340_s3 + $0x78] sm:$0xff]  }
  0x40   :  { %504 = vmatpush1.bf16.msra.mxu0 %v962_v5  ;;  %834 = vmatprep.subr.bf16.mxu1 %v963_v10  ;;  %v976_v25 = vld [vmem:[%s1340_s3 + $0x30] sm:$0xff]   ;;  %v978_v27 = vld [vmem:[%s1340_s3 + $0x38] sm:$0xff]   ;;  %v98_v31 = vld [vmem:[%s1339_s2] sm:$0x3] }
  0x41   :  { %v103_v33 = vrot.slane %v98_v31, %v102_v30  ;;  %v107_v34 = vrot.slane %v98_v31, %v106_v32  ;;  %v554_v57 = vld [vmem:[%s1341_s4] sm:$0x7]  ;;  %s1007_s4 = smov [#allocation2]  }
  0x42   :  { %463 = vmatmul.mubr.bf16.vlgmr.msra.gmra.mrb[0].mxu1 %v30_v11  ;;  %v558_v59 = vrot.slane %v554_v57, %v102_v30  ;;  %s743_s17 = sshll.u32 %s1007_s4, 4  ;;  %s744_s17 = int_to_ptr.vmem [resolvable:$true] %s743_s17 }
  0x43   :  { %506 = vmatmul.mubr.bf16.vlgmr.msra.gmra.mrb[0].mxu0 %v32_v12  ;;  %835 = vmatpush3.bf16.msra.mxu1 %v964_v13  ;;  %s983_s18 = scalar_lea.vmem %s744_s17, 256  ;;  %p988_p1 = scmp.lt.s32.totalorder %s744_s17, %s744_s17 }
  0x44   :  { %836 = vmatprep.subr.bf16.mxu1 %v965_v14  ;;  %p984_p0 = scmp.ne.s32.totalorder %s744_s17, %s983_s18  ;;  %p989_p2 = scmp.lt.s32.totalorder %s983_s18, %s983_s18 }
  0x46   :  { %p990_p3 = por %p989_p2, %p988_p1 }
  0x47   :  { %837 = vmatpush3.bf16.msra.mxu1 %v966_v15 }
  0x48   :  { %838 = vmatprep.subr.bf16.mxu1 %v967_v16  ;;  %p991_p4 = pnand %p990_p3, %p984_p0 }
  0x4b   :  { %839 = vmatpush3.bf16.msra.mxu1 %v968_v17 }
  0x4c   :  { %840 = vmatprep.subr.bf16.mxu1 %v969_v18 }
  0x4f   :  { %841 = vmatpush3.bf16.msra.mxu1 %v970_v19 }
  0x50   :  { %842 = vmatprep.subr.bf16.mxu1 %v971_v20 }
  0x53   :  { %843 = vmatpush3.bf16.msra.mxu1 %v972_v21  ;;  %v732_v21 = vsub.s32 2, %v1304_v29 }
  0x54   :  { %844 = vmatprep.subr.bf16.mxu1 %v973_v22  ;;  %v727_v22 = vrot.slane %v554_v57, %v106_v32 }
  0x57   :  { %845 = vmatpush3.bf16.msra.mxu1 %v974_v23 }
  0x58   :  { %846 = vmatprep.subr.bf16.mxu1 %v975_v24  ;;  %v733_v24 = vrot.slane %v554_v57, %v732_v21 }
  0x5b   :  { %847 = vmatpush3.bf16.msra.mxu1 %v976_v25 }
  0x5c   :  { %848 = vmatprep.subr.bf16.mxu1 %v977_v26 }
  0x5f   :  { %849 = vmatpush3.bf16.msra.mxu1 %v978_v27 }
 0x115   :  { %v464_v35 = vpop.f32.mrb[0].mxu1 }
 0x116   :  { %v507_v36 = vpop.f32.mrb[0].mxu0  ;;  %v465_v37 = vadd.f32 %v464_v35, %v103_v33  ;;  %v466_v38 = vpop.f32.mrb[1].mxu1 }
 0x117   :  { %v509_v39 = vpop.f32.mrb[1].mxu0  ;;  %v467_v40 = vadd.f32 %v466_v38, %v107_v34  ;;  %v468_v41 = vpop.f32.mrb[2].mxu1 }
 0x118   :  { %v511_v42 = vpop.f32.mrb[2].mxu0  ;;  %v508_v43 = vadd.f32 %v507_v36, %v465_v37  ;;  %v469_v44 = vadd.f32 %v468_v41, %v103_v33  ;;  %v470_v45 = vpop.f32.mrb[3].mxu1 }
 0x119   :  { %v513_v46 = vpop.f32.mrb[3].mxu0  ;;  %v510_v47 = vadd.f32 %v509_v39, %v467_v40  ;;  %v471_v48 = vadd.f32 %v470_v45, %v107_v34 }
 0x11a   :  { %v512_v49 = vadd.f32 %v511_v42, %v469_v44  ;;  %v516_v51 = vmax.f32 %v508_v43, 0.0 }
 0x11b   :  { %v514_v50 = vadd.f32 %v513_v46, %v471_v48  ;;  %v517_v53 = vmax.f32 %v510_v47, 0.0 }
 0x11c   :  { %v518_v52 = vmax.f32 %v512_v49, 0.0 }
 0x11d   :  { %v519_v54 = vmax.f32 %v514_v50, 0.0 }
 0x11e   :  { %v520_v55 = vpack.c.bf16 %v518_v52, %v516_v51 }
 0x11f   :  { %v521_v56 = vpack.c.bf16 %v519_v54, %v517_v53 }
 0x121   :  { %687 = vmatprep.mubr.bf16.mxu1 %v521_v56 }
 0x122   :  { %688 = vmatmul.mubr.bf16.vlgmr.msra.gmra.mrb[4].mxu1 %v520_v55 }
 0x1f5   :  { %v850_v58 = vpop.f32.mrb[4].mxu1 }
 0x1f6   :  { %v851_v60 = vpop.f32.mrb[5].mxu1 }
 0x1f7   :  { %v852_v61 = vadd.f32 %v851_v60, %v850_v58  ;;  %v853_v62 = vpop.f32.mrb[6].mxu1 }
 0x1f8   :  { %v854_v63 = vpop.f32.mrb[7].mxu1 }
 0x1f9   :  { %v855_v0 = vadd.f32 %v854_v63, %v853_v62  ;;  %v690_v1 = vadd.f32 %v852_v61, %v558_v59 }
 0x1fb   :  { %v697_v2 = vsel %vm696_vm0, %v690_v1, 0.0  ;;  %v693_v3 = vadd.f32 %v855_v0, %v558_v59 }
 0x1fc   :  { %698 = vadd.xlane.f32.xlu0 %v697_v2 }
 0x1fd   :  { %v700_v4 = vsel %vm696_vm0, %v693_v3, 0.0 }
 0x200   :  { %701 = vadd.xlane.f32.xlu0 %v700_v4 }
 0x289   :  { %v699_v5 = vpop.xlane.xlu0 %698 }
 0x28a   :  { %v704_v6 = vmul.f32 0.0625, %v699_v5 }
 0x28c   :  { %v706_v7 = vsub.f32 %v690_v1, %v704_v6 }
 0x28d   :  { %v702_v8 = vpop.xlane.xlu0 %701 }
 0x28e   :  { %v705_v9 = vmul.f32 0.0625, %v702_v8  ;;  %v708_v10 = vmul.f32 %v706_v7, %v706_v7 }
 0x290   :  { %v707_v11 = vsub.f32 %v693_v3, %v705_v9  ;;  %v710_v12 = vsel %vm696_vm0, %v708_v10, 0.0 }
 0x291   :  { %711 = vadd.xlane.f32.xlu1 %v710_v12 }
 0x292   :  { %v709_v13 = vmul.f32 %v707_v11, %v707_v11 }
 0x294   :  { %v713_v14 = vsel %vm696_vm0, %v709_v13, 0.0 }
 0x295   :  { %714 = vadd.xlane.f32.xlu1 %v713_v14 }
 0x31e   :  { %v712_v15 = vpop.xlane.xlu1 %711 }
 0x31f   :  { %v716_v16 = vmul.f32 0.0625, %v712_v15 }
 0x321   :  { %v718_v17 = vadd.f32 1e-05, %v716_v16 }
 0x322   :  { %v715_v18 = vpop.xlane.xlu1 %714 }
 0x323   :  { %979 = vrsqrt.f32 %v718_v17  ;;  %v717_v19 = vmul.f32 0.0625, %v715_v18 }
 0x325   :  { %v719_v20 = vadd.f32 1e-05, %v717_v19 }
 0x327   :  { %981 = vrsqrt.f32 %v719_v20 }
 0x32d   :  { %v980_v23 = vpop.eup %979 }
 0x32e   :  { %v722_v25 = vmul.f32 %v980_v23, %v706_v7 }
 0x330   :  { %v728_v26 = vmul.f32 %v727_v22, %v722_v25 }
 0x331   :  { %v982_v27 = vpop.eup %981 }
 0x332   :  { %v723_v28 = vmul.f32 %v982_v27, %v707_v11  ;;  %v734_v30 = vadd.f32 %v733_v24, %v728_v26 }
 0x334   :  { %v729_v31 = vmul.f32 %v727_v22, %v723_v28  ;;  %736 = vst.msk [vmem:[#allocation2] sm:$0xff] %vm696_vm0, %v734_v30 }
 0x336   :  { %v735_v33 = vadd.f32 %v733_v24, %v729_v31 }
 0x338   :  { %737 = vst.msk [vmem:[#allocation2 + $0x8] sm:$0xff] %vm696_vm0, %v735_v33 }
 0x339   :  { %994 = shalt.err (!%p991_p4)
}
 0x33a   :  { %s995_s21 = scalar_lea.hbm %s1342_s5, 256 }
 0x33b   :  { %p996_p5 = scmp.ne.s32.totalorder %s1342_s5, %s995_s21  ;;  %p999_p6 = scmp.lt.u32.totalorder %s995_s21, %s1342_s5 }
 0x33d   :  { %p1001_p7 = pnand %p999_p6, %p996_p5 }
 0x33f   :  { %1004 = shalt.err (!%p1001_p7)
}
 0x340   :  { %s1008_s26 = smov 128   ;;  %s1009_s27 = smov 8  }
 0x341   :  { %749 = dma.vmem_to_hbm [thread:$0]  %s744_s17, 256, %s1342_s5, [#allocation3], %s1008_s26, %s1008_s26, %s1009_s27  }
 0x342   :  { %1005 = dma.done.wait [#allocation3], 256  }
 0x343   :  { %1006 = vsyncadd [#allocation3], 4294967040 }
 0x344   :  { %753 = vsyncpa [#allocation3], 1 }

</bundles_post_ra>
